<compile_context>
chip_gen: v5e
topology: v5e:2x2
jax: 0.10.0
libtpu: 0.0.40
codegen_flags: <defaults>
</compile_context>

<pallas_src>
import math

import jax
import jax.numpy as jnp
from jax.experimental import pallas as pl
from jax.experimental.pallas import tpu as pltpu


_TARGET_STEP_BYTES = 1 << 20   # aim for >= ~1 MiB of output written per grid step


def _vmem_capacity_bytes():
    """Physical per-core VMEM; conservative (v7x) fallback if the query fails."""
    try:
        cap = int(pltpu.get_tpu_info().vmem_capacity_bytes)
        if cap > 0:
            return cap
    except Exception:
        pass
    return 64 << 20


def _plan_blocks(base_shape, counts, itemsize, block_budget):
    """Split each axis' 2**counts replication between in-register (block) and grid."""
    ndim = len(base_shape)
    reps = [1 << c for c in counts]
    inblk = [1] * ndim
    blk_bytes = math.prod(base_shape) * itemsize

    for ax in range(ndim - 1, -1, -1):
        full = reps[ax]
        r = 1
        dim = base_shape[ax]
        while r < full:
            if blk_bytes * 2 > block_budget:
                break
            d = dim * r
            aligned = not ((ax == ndim - 1 and d % 128 != 0) or
                           (ax == ndim - 2 and d % 8 != 0))
            # Keep growing minor axes until lane/sublane aligned; otherwise
            # stop once the per-step byte target is met.
            if aligned and blk_bytes >= _TARGET_STEP_BYTES:
                break
            r *= 2
            blk_bytes *= 2
        if r < full:
            d = dim * r
            # A grid-split block must be (8,128)-aligned on the minor axes;
            # if unreachable, fall back to the full extent (always legal).
            if (ax == ndim - 1 and d % 128 != 0) or (ax == ndim - 2 and d % 8 != 0):
                blk_bytes = (blk_bytes // r) * full
                r = full
        inblk[ax] = r

    block_shape = tuple(base_shape[ax] * inblk[ax] for ax in range(ndim))
    grid_reps = tuple(reps[ax] // inblk[ax] for ax in range(ndim))
    return inblk, block_shape, grid_reps


def simple_cat(a, b, c, dimensions):
    # --- validation --------------------------------------------------------
    if len(dimensions) < 1:
        raise ValueError("SimpleCatModule needs at least one dimension")
    if not (a.ndim == b.ndim == c.ndim):
        raise ValueError("a, b, c must have the same rank")
    if not (a.dtype == b.dtype == c.dtype):
        raise ValueError("a, b, c must share a dtype (no implicit promotion)")
    ndim = a.ndim
    for d in dimensions:
        if not -ndim <= d < ndim:
            raise ValueError(f"cat dimension {d} out of range for rank {ndim}")
    cat_dim = dimensions[0] % ndim
    for ax in range(ndim):
        if ax != cat_dim and not (a.shape[ax] == b.shape[ax] == c.shape[ax]):
            raise ValueError(
                f"non-concat dim {ax} mismatch: {a.shape} {b.shape} {c.shape}")

    counts = [0] * ndim
    for d in dimensions[1:]:
        counts[d % ndim] += 1

    # True (unfolded) output shape.
    out_shape_true = tuple(
        (sum(x.shape[ax] for x in (a, b, c)) if ax == cat_dim else a.shape[ax])
        * (1 << counts[ax])
        for ax in range(ndim))

    # --- lane fold: collapse untouched trailing axes into the last touched
    # axis (pure row-major reshape, mathematically exact, done in the wrapper)
    touched = [ax for ax in range(ndim) if ax == cat_dim or counts[ax] > 0]
    fold_start = min(max(max(touched), 1), ndim - 1)

    def fold(x):
        return x.reshape(x.shape[:fold_start] + (math.prod(x.shape[fold_start:]),))

    ins = tuple(fold(x) for x in (a, b, c))
    nd = fold_start + 1
    counts_f = list(counts[:fold_start]) + [sum(counts[fold_start:])]
    in_shapes = tuple(tuple(x.shape) for x in ins)

    base_shape = list(in_shapes[0])
    base_shape[cat_dim] = sum(s[cat_dim] for s in in_shapes)
    base_shape = tuple(base_shape)

    # --- generation-aware block / grid plan --------------------------------
    itemsize = jnp.dtype(a.dtype).itemsize
    vmem_cap = _vmem_capacity_bytes()
    base_bytes = math.prod(base_shape) * itemsize
    block_budget = max(base_bytes, vmem_cap // 4)   # <= ~1/4 physical VMEM

    inblk, block_shape, grid_reps = _plan_blocks(
        base_shape, counts_f, itemsize, block_budget)
    out_shape_f = tuple(base_shape[ax] * (1 << counts_f[ax]) for ax in range(nd))

    grid_axes = [ax for ax in range(nd) if grid_reps[ax] > 1]
    pos = {ax: i for i, ax in enumerate(grid_axes)}
    grid = tuple(grid_reps[ax] for ax in grid_axes)
    if not grid:
        grid = (1,)
        dim_sem = ("arbitrary",)
    else:
        dim_sem = ("parallel",) * len(grid)   # replica writes are independent

    def in_index_map(*g):
        # Constant block index: inputs are DMA'd to VMEM once and stay resident.
        return (0,) * nd

    def out_index_map(*g):
        # Replica tiles land at disjoint block offsets along the fan-out axes.
        return tuple(g[pos[ax]] if ax in pos else 0 for ax in range(nd))

    def cat_kernel(a_ref, b_ref, c_ref, o_ref):
        # Compose one output block in-register: concat, then ONE r-way
        # replication per axis (minor axes first, while the value is small).
        val = jnp.concatenate([a_ref[...], b_ref[...], c_ref[...]], axis=cat_dim)
        for ax in range(nd - 1, -1, -1):
            if inblk[ax] > 1:
                val = jnp.concatenate([val] * inblk[ax], axis=ax)
        o_ref[...] = val   # single dense store; writeback DMA pipelined over the grid

    # --- resource sizing ----------------------------------------------------
    in_bytes = sum(math.prod(s) for s in in_shapes) * itemsize
    out_bytes = math.prod(out_shape_f) * itemsize
    blk_bytes = math.prod(block_shape) * itemsize
    needed = 2 * in_bytes + 4 * blk_bytes + (4 << 20)   # inputs + 2x out buf + headroom
    vmem_limit = min(max(needed, 16 << 20), int(vmem_cap * 0.85))

    out_f = pl.pallas_call(
        cat_kernel,
        out_shape=jax.ShapeDtypeStruct(out_shape_f, a.dtype),
        grid=grid,
        in_specs=[pl.BlockSpec(in_shapes[i], in_index_map) for i in range(3)],
        out_specs=pl.BlockSpec(block_shape, out_index_map),
        compiler_params=pltpu.CompilerParams(
            dimension_semantics=dim_sem,
            vmem_limit_bytes=vmem_limit),
        cost_estimate=pl.CostEstimate(
            flops=0, transcendentals=0,
            bytes_accessed=int(in_bytes + out_bytes)),
    )(*ins)

    return out_f.reshape(out_shape_true)


def simple_cat_ref(a, b, c, dimensions):
    other = jnp.concatenate((a, b, c), axis=dimensions[0])
    for d in dimensions[1:]:
        other = jnp.concatenate((other, other), axis=d)
    return other


if __name__ == "__main__":
    key = jax.random.PRNGKey(0)
    ka, kb, kc = jax.random.split(key, 3)

    def run_case(shape, dims):
        a = jax.random.normal(ka, shape, dtype=jnp.float32)
        b = jax.random.normal(kb, shape, dtype=jnp.float32)
        c = jax.random.normal(kc, shape, dtype=jnp.float32)
        out = jax.block_until_ready(simple_cat(a, b, c, dims))
        ref = simple_cat_ref(a, b, c, dims)
        assert out.shape == ref.shape, (dims, out.shape, ref.shape)
        assert jnp.array_equal(out, ref), f"mismatch vs reference for dims={dims}"

    # Case 1: SimpleCatModule(0, 1, 2) on 3-D inputs (torch_glow test shapes).
    run_case((2, 4, 16), (0, 1, 2))

    # Case 2: SimpleCatModule(0, 1, 2, 3) on 4-D inputs.
    run_case((2, 3, 4, 16), (0, 1, 2, 3))

    # Case 3: heavy leading-axis replication -> exercises grid fan-out
    # (multiple >= 1 MiB replica blocks written via the output index_map).
    run_case((4, 8, 128), (1, 0, 0, 0, 0, 0, 2))

    # Case 4: untouched trailing axes -> exercises the wrapper-side lane fold
    # (kernel sees a lane-dense 2-D problem, reshaped back afterwards).
    run_case((2, 4, 8, 16), (1, 0, 1))

    print("KERNEL_OK")
</pallas_src>

<mosaic_0001>
module attributes {stable_mosaic.version = 11 : i64} {
  func.func @cat_kernel(%arg0: i32, %arg1: memref<2x4x16xf32, #tpu.memory_space<vmem>>, %arg2: memref<2x4x16xf32, #tpu.memory_space<vmem>>, %arg3: memref<2x4x16xf32, #tpu.memory_space<vmem>>, %arg4: memref<6x8x32xf32, #tpu.memory_space<vmem>>) attributes {dimension_semantics = [#tpu.dimension_semantics<arbitrary>], iteration_bounds = array<i64: 1>, scalar_prefetch = 0 : i64, scratch_operands = 0 : i64, tpu.core_type = #tpu.core_type<tc>, window_params = [{pipeline_mode = #tpu.pipeline_mode<synchronous>, transform_indices = @transform_0, window_bounds = array<i64: 2, 4, 16>}, {pipeline_mode = #tpu.pipeline_mode<synchronous>, transform_indices = @transform_1, window_bounds = array<i64: 2, 4, 16>}, {pipeline_mode = #tpu.pipeline_mode<synchronous>, transform_indices = @transform_2, window_bounds = array<i64: 2, 4, 16>}, {pipeline_mode = #tpu.pipeline_mode<synchronous>, transform_indices = @transform_3, window_bounds = array<i64: 6, 8, 32>}]} {
    %c0 = arith.constant 0 : index
    %c0_0 = arith.constant 0 : index
    %c0_1 = arith.constant 0 : index
    %0 = vector.load %arg1[%c0, %c0_0, %c0_1] : memref<2x4x16xf32, #tpu.memory_space<vmem>>, vector<2x4x16xf32>
    %c0_2 = arith.constant 0 : index
    %c0_3 = arith.constant 0 : index
    %c0_4 = arith.constant 0 : index
    %1 = vector.load %arg2[%c0_2, %c0_3, %c0_4] : memref<2x4x16xf32, #tpu.memory_space<vmem>>, vector<2x4x16xf32>
    %c0_5 = arith.constant 0 : index
    %c0_6 = arith.constant 0 : index
    %c0_7 = arith.constant 0 : index
    %2 = vector.load %arg3[%c0_5, %c0_6, %c0_7] : memref<2x4x16xf32, #tpu.memory_space<vmem>>, vector<2x4x16xf32>
    %3 = tpu.concatenate %0, %1, %2 in 0 : vector<2x4x16xf32>, vector<2x4x16xf32>, vector<2x4x16xf32> -> vector<6x4x16xf32>
    %4 = tpu.concatenate %3, %3 in 2 : vector<6x4x16xf32>, vector<6x4x16xf32> -> vector<6x4x32xf32>
    %5 = tpu.concatenate %4, %4 in 1 : vector<6x4x32xf32>, vector<6x4x32xf32> -> vector<6x8x32xf32>
    %c0_8 = arith.constant 0 : index
    %c0_9 = arith.constant 0 : index
    %c0_10 = arith.constant 0 : index
    %6 = vector.load %arg4[%c0_8, %c0_9, %c0_10] : memref<6x8x32xf32, #tpu.memory_space<vmem>>, vector<6x8x32xf32>
    tpu.vector_store %arg4[%c0_8, %c0_9, %c0_10], %5 {strides = array<i32>} : memref<6x8x32xf32, #tpu.memory_space<vmem>>, vector<6x8x32xf32>,
    return
  }
  func.func @transform_0(%arg0: i32) -> (i32, i32, i32) {
    %c0_i32 = arith.constant 0 : i32
    %c0_i32_0 = arith.constant 0 : i32
    %c0_i32_1 = arith.constant 0 : i32
    %c0_i32_2 = arith.constant 0 : i32
    return %c0_i32, %c0_i32_0, %c0_i32_1 : i32, i32, i32
  }
  func.func @transform_1(%arg0: i32) -> (i32, i32, i32) {
    %c0_i32 = arith.constant 0 : i32
    %c0_i32_0 = arith.constant 0 : i32
    %c0_i32_1 = arith.constant 0 : i32
    %c0_i32_2 = arith.constant 0 : i32
    return %c0_i32, %c0_i32_0, %c0_i32_1 : i32, i32, i32
  }
  func.func @transform_2(%arg0: i32) -> (i32, i32, i32) {
    %c0_i32 = arith.constant 0 : i32
    %c0_i32_0 = arith.constant 0 : i32
    %c0_i32_1 = arith.constant 0 : i32
    %c0_i32_2 = arith.constant 0 : i32
    return %c0_i32, %c0_i32_0, %c0_i32_1 : i32, i32, i32
  }
  func.func @transform_3(%arg0: i32) -> (i32, i32, i32) {
    %c0_i32 = arith.constant 0 : i32
    %c0_i32_0 = arith.constant 0 : i32
    %c0_i32_1 = arith.constant 0 : i32
    %c0_i32_2 = arith.constant 0 : i32
    return %c0_i32, %c0_i32_0, %c0_i32_1 : i32, i32, i32
  }
}

</mosaic_0001>

<bundles_post_ra>
// kernel: tpu_custom_call.1
= control target key start
LH: loop header
LB: loop body
LE: loop exit
PB: predicated region body
PF: predicated region fallthrough
CT: control target
= control target key end

     0   :  { %8 = vsyncpa [#allocation3], 0  ;;  %s321_s0 = inlined_call_operand.hbm [shape: f32[2,4,16], index: 0, kind: input, shape index: {}]   ;;  %s322_s1 = inlined_call_operand.hbm [shape: f32[2,4,16], index: 1, kind: input, shape index: {}]   ;;  %s323_s2 = inlined_call_operand.hbm [shape: f32[2,4,16], index: 2, kind: input, shape index: {}]   ;;  %s324_s3 = inlined_call_operand.hbm [shape: f32[6,8,32], index: 3, kind: output, shape index: {}]  }
   0x1   :  { %9 = vsyncpa [#allocation6], 0 }
   0x2   :  { %10 = vsyncpa [#allocation4], 0  ;;  %s28_s14 = sshll.u32 %s322_s1, 4  ;;  %s262_s15 = smov [#allocation5]   ;;  %s29_s14 = int_to_ptr.hbm [resolvable:$true] %s28_s14 }
   0x3   :  { %s30_s16 = sshll.u32 %s262_s15, 4  ;;  %s15_s19 = sshll.u32 %s321_s0, 4  ;;  %s31_s16 = int_to_ptr.vmem [resolvable:$true] %s30_s16  ;;  %s16_s19 = int_to_ptr.hbm [resolvable:$true] %s15_s19 }
   0x4   :  { %s263_s20 = smov 64   ;;  %s264_s21 = smov 4  }
   0x5   :  { %36 = dma.hbm_to_vmem [thread:$0]  %s29_s14, 128, %s31_s16, [#allocation6], %s263_s20, %s263_s20, %s264_s21  }
   0x6   :  { %s265_s22 = smov [#allocation2]   ;;  %s41_s26 = sshll.u32 %s323_s2, 4  ;;  %s42_s26 = int_to_ptr.hbm [resolvable:$true] %s41_s26 }
   0x7   :  { %s17_s23 = sshll.u32 %s265_s22, 4  ;;  %s266_s1 = smov [#allocation7]   ;;  %s18_s23 = int_to_ptr.vmem [resolvable:$true] %s17_s23 }
   0x8   :  { %23 = dma.hbm_to_vmem [thread:$0]  %s16_s19, 128, %s18_s23, [#allocation3], %s263_s20, %s263_s20, %s264_s21  }
   0x9   :  { %s43_s27 = sshll.u32 %s266_s1, 4  ;;  %s44_s27 = int_to_ptr.vmem [resolvable:$true] %s43_s27 }
   0xa   :  { %49 = dma.hbm_to_vmem [thread:$0]  %s42_s26, 128, %s44_s27, [#allocation6], %s263_s20, %s263_s20, %s264_s21  }
   0xb   :  { %256 = dma.done.wait [#allocation3], 128  }
   0xc   :  { %257 = vsyncadd [#allocation3], 4294967168 }
   0xd   :  { %258 = dma.done.wait [#allocation6], 256  }
   0xe   :  { %259 = vsyncadd [#allocation6], 4294967040  ;;  %v64_v0 = vld [vmem:[#allocation5] sm:$0xf]  ;;  %v62_v1 = vld [vmem:[#allocation2] sm:$0xf] }
   0xf   :  { %s267_s0 = smov 16   ;;  %v66_v2 = vld [vmem:[#allocation7] sm:$0xf]  ;;  %v65_v3 = vld [vmem:[#allocation5 + $0x4] sm:$0xf]  ;;  %vm92_vm0 = vcmask 130048  }
  0x10   :  { %78 = vrot.lane.b32.xlu1 %v64_v0, %s267_s0  ;;  %74 = vrot.lane.b32.xlu0 %v62_v1, %s267_s0  ;;  %v63_v4 = vld [vmem:[#allocation2 + $0x4] sm:$0xf]  ;;  %v67_v5 = vld [vmem:[#allocation7 + $0x4] sm:$0xf]  ;;  %vm117_vm1 = vcmask 1043456   ;;  %vm124_vm2 = vcmask 261120  }
  0x11   :  { %82 = vrot.lane.b32.xlu2 %v66_v2, %s267_s0  ;;  %s268_s2 = smov [#allocation8]   ;;  %s137_s4 = sshll.u32 %s324_s3, 4  ;;  %s138_s4 = int_to_ptr.hbm [resolvable:$true] %s137_s4 }
  0x12   :  { %s135_s28 = sshll.u32 %s268_s2, 4  ;;  %s269_s5 = smov 128   ;;  %s136_s28 = int_to_ptr.vmem [resolvable:$true] %s135_s28 }
  0x13   :  { %s270_s6 = smov 8  }
  0x18   :  { %80 = vrot.lane.b32.xlu1 %v65_v3, %s267_s0  ;;  %76 = vrot.lane.b32.xlu0 %v63_v4, %s267_s0 }
  0x19   :  { %84 = vrot.lane.b32.xlu2 %v67_v5, %s267_s0 }
  0x6b   :  { %v83_v6 = vpop.permute.xlu2 %82 }
  0x6c   :  { %v97_v7 = vsel %vm92_vm0, %v66_v2, %v83_v6 }
  0x6d   :  { %v109_v8 = vrot.slane %v97_v7, 4 }
  0x6f   :  { %v122_v9 = vsel %vm117_vm1, %v97_v7, %v109_v8 }
  0x70   :  { %129 = vst.msk [vmem:[#allocation8 + $0x20] sm:$0xff] %vm124_vm2, %v122_v9 }
  0x73   :  { %v85_v10 = vpop.permute.xlu2 %84 }
  0x74   :  { %v98_v11 = vsel %vm92_vm0, %v67_v5, %v85_v10 }
  0x75   :  { %v110_v12 = vrot.slane %v98_v11, 4 }
  0x77   :  { %v123_v13 = vsel %vm117_vm1, %v98_v11, %v110_v12 }
  0x78   :  { %130 = vst.msk [vmem:[#allocation8 + $0x28] sm:$0xff] %vm124_vm2, %v123_v13 }
  0x82   :  { %v79_v14 = vpop.permute.xlu1 %78  ;;  %v75_v15 = vpop.permute.xlu0 %74 }
  0x83   :  { %v95_v16 = vsel %vm92_vm0, %v64_v0, %v79_v14  ;;  %v93_v17 = vsel %vm92_vm0, %v62_v1, %v75_v15 }
  0x84   :  { %v107_v18 = vrot.slane %v95_v16, 4  ;;  %v105_v19 = vrot.slane %v93_v17, 4 }
  0x86   :  { %v120_v20 = vsel %vm117_vm1, %v95_v16, %v107_v18  ;;  %v118_v21 = vsel %vm117_vm1, %v93_v17, %v105_v19 }
  0x87   :  { %127 = vst.msk [vmem:[#allocation8 + $0x10] sm:$0xff] %vm124_vm2, %v120_v20 }
  0x88   :  { %125 = vst.msk [vmem:[#allocation8] sm:$0xff] %vm124_vm2, %v118_v21 }
  0x8a   :  { %v81_v22 = vpop.permute.xlu1 %80  ;;  %v77_v23 = vpop.permute.xlu0 %76 }
  0x8b   :  { %v96_v24 = vsel %vm92_vm0, %v65_v3, %v81_v22  ;;  %v94_v25 = vsel %vm92_vm0, %v63_v4, %v77_v23 }
  0x8c   :  { %v108_v26 = vrot.slane %v96_v24, 4  ;;  %v106_v27 = vrot.slane %v94_v25, 4 }
  0x8e   :  { %v121_v28 = vsel %vm117_vm1, %v96_v24, %v108_v26  ;;  %v119_v29 = vsel %vm117_vm1, %v94_v25, %v106_v27 }
  0x8f   :  { %128 = vst.msk [vmem:[#allocation8 + $0x18] sm:$0xff] %vm124_vm2, %v121_v28 }
  0x90   :  { %126 = vst.msk [vmem:[#allocation8 + $0x8] sm:$0xff] %vm124_vm2, %v119_v29 }
  0x91   :  { %143 = dma.vmem_to_hbm [thread:$0]  %s136_s28, 768, %s138_s4, [#allocation4], %s269_s5, %s269_s5, %s270_s6  }
  0x92   :  { %260 = dma.done.wait [#allocation4], 768  }
  0x93   :  { %261 = vsyncadd [#allocation4], 4294966528 }
  0x94   :  { %148 = vsyncpa [#allocation3], 1 }
  0x95   :  { %149 = vsyncpa [#allocation6], 1 }
  0x96   :  { %150 = vsyncpa [#allocation4], 1 }

</bundles_post_ra>
